<compile_context>
chip_gen: v6e
topology: v6e:2x2x1
jax: 0.10.0
libtpu: 0.0.40
codegen_flags: <defaults>
</compile_context>

<pallas_src>
import functools
import math

import jax
import jax.numpy as jnp
from jax.experimental import pallas as pl
from jax.experimental.pallas import tpu as pltpu

_LANE = 128      # vreg lane width (last dim)
_SUBLANE = 8     # vreg sublane count (second-to-last dim, f32)


def _round_up(n, m):
    return ((n + m - 1) // m) * m


def _fused_mlp_kernel(x_ref, w_ref, o_ref, *, layer_meta):
    """Whole MLP in one kernel: h -> ReLU(h @ W + b) per hidden layer, final Linear.

    layer_meta: static tuple of (w_row_off, b_row_off, fan_in, fan_out) per layer,
    indexing into the single packed parameter buffer `w_ref`.
    """
    h = x_ref[...]
    num_layers = len(layer_meta)
    for idx, (w_off, b_off, fan_in, fan_out) in enumerate(layer_meta):
        is_last = idx == num_layers - 1
        # Final layer uses the full lane-dense output width (extra cols are exactly 0
        # thanks to zero-padded weights/bias); hidden layers use their true widths.
        cols = o_ref.shape[-1] if is_last else fan_out
        w = w_ref[w_off:w_off + fan_in, :cols]        # static slice -> MXU RHS
        b = w_ref[b_off:b_off + 1, :cols]             # (1, cols) bias row
        h = jnp.dot(h, w, preferred_element_type=jnp.float32) + b
        if not is_last:
            h = jnp.maximum(h, 0.0)                   # ReLU on hidden layers only
    o_ref[...] = h.astype(o_ref.dtype)


def init_qnetwork_params(key, state_size, action_size, hidden_layers):
    """PyTorch nn.Linear-style init: W [out, in], b [out], U(-1/sqrt(fan_in), +)."""
    sizes = [state_size] + list(hidden_layers) + [action_size]
    params = []
    for fan_in, fan_out in zip(sizes[:-1], sizes[1:]):
        key, kw, kb = jax.random.split(key, 3)
        bound = 1.0 / math.sqrt(fan_in)
        w = jax.random.uniform(kw, (fan_out, fan_in), jnp.float32, -bound, bound)
        b = jax.random.uniform(kb, (fan_out,), jnp.float32, -bound, bound)
        params.append((w, b))
    return params


def prepare_qnetwork_params(params):
    """One-time prep: pack all W^T and biases into ONE lane-dense f32 buffer.

    Layout per layer (rows 8-aligned so every in-kernel slice is tile-aligned):
        rows [w_off, w_off + fan_in) : W^T  (true fan_in x fan_out, rest zero)
        row  b_off                   : bias (true fan_out,          rest zero)
    Returns (packed [R, C] f32, layer_meta) with C = round_up(max fan_out, 128).
    """
    cols = _round_up(max(w.shape[0] for w, _ in params), _LANE)
    layer_meta = []
    row = 0
    for w, _ in params:
        fan_out, fan_in = w.shape
        w_off = row
        b_off = _round_up(w_off + fan_in, _SUBLANE)
        layer_meta.append((w_off, b_off, fan_in, fan_out))
        row = b_off + _SUBLANE
    total_rows = _round_up(row, _SUBLANE)

    packed = jnp.zeros((total_rows, cols), jnp.float32)
    for (w_off, b_off, fan_in, fan_out), (w, b) in zip(layer_meta, params):
        packed = packed.at[w_off:w_off + fan_in, :fan_out].set(w.T)
        packed = packed.at[b_off, :fan_out].set(b)
    return packed, tuple(layer_meta)


@functools.partial(jax.jit, static_argnames=("layer_meta", "action_size"))
def qnetwork_forward(packed_params, state, *, layer_meta, action_size):
    """state: [B, state_size] -> action values [B, action_size] (one fused kernel)."""
    B = state.shape[0]
    out_p = _round_up(action_size, _LANE)   # lane-dense output block, sliced below

    flops = sum(2 * B * fi * fo for _, _, fi, fo in layer_meta)
    bytes_accessed = 4 * (state.size + packed_params.size + B * out_p)

    kernel = functools.partial(_fused_mlp_kernel, layer_meta=layer_meta)
    out_pad = pl.pallas_call(
        kernel,
        out_shape=jax.ShapeDtypeStruct((B, out_p), jnp.float32),
        in_specs=[pl.BlockSpec(memory_space=pltpu.MemorySpace.VMEM)] * 2,
        out_specs=pl.BlockSpec(memory_space=pltpu.MemorySpace.VMEM),
        cost_estimate=pl.CostEstimate(flops=flops, transcendentals=0,
                                      bytes_accessed=bytes_accessed),
    )(state.astype(jnp.float32), packed_params)

    return out_pad[:, :action_size]


if __name__ == "__main__":
    # Small shapes consistent with the module: state_size=32, hidden=(64, 32), action_size=4
    state_size = 32
    action_size = 4
    hidden_layers = (64, 32)
    batch = 8

    key = jax.random.PRNGKey(0)
    kp, kx = jax.random.split(key)
    params = init_qnetwork_params(kp, state_size, action_size, hidden_layers)
    packed, layer_meta = prepare_qnetwork_params(params)   # transpose + pack once
    state = jax.random.normal(kx, (batch, state_size), dtype=jnp.float32)

    out = qnetwork_forward(packed, state, layer_meta=layer_meta, action_size=action_size)
    out = jax.block_until_ready(out)

    # Sanity check against plain JAX reference (PyTorch-convention weights).
    ref = state
    for idx, (w, b) in enumerate(params):
        ref = ref @ w.T + b
        if idx != len(params) - 1:
            ref = jnp.maximum(ref, 0.0)
    assert out.shape == (batch, action_size)
    assert jnp.allclose(out, ref, atol=1e-5, rtol=1e-5)

    print("KERNEL_OK")
</pallas_src>

<mosaic_0001>
module attributes {stable_mosaic.version = 11 : i64} {
  func.func @_fused_mlp_kernel(%arg0: memref<8x32xf32, #tpu.memory_space<vmem>>, %arg1: memref<152x128xf32, #tpu.memory_space<vmem>>, %arg2: memref<8x128xf32, #tpu.memory_space<vmem>>) attributes {dimension_semantics = [], scalar_prefetch = 0 : i64, scratch_operands = 0 : i64, tpu.core_type = #tpu.core_type<tc>} {
    %c0 = arith.constant 0 : index
    %c0_0 = arith.constant 0 : index
    %0 = vector.load %arg0[%c0, %c0_0] : memref<8x32xf32, #tpu.memory_space<vmem>>, vector<8x32xf32>
    %c0_1 = arith.constant 0 : index
    %c0_2 = arith.constant 0 : index
    %1 = vector.load %arg1[%c0_1, %c0_2] : memref<152x128xf32, #tpu.memory_space<vmem>>, vector<32x64xf32>
    %c32 = arith.constant 32 : index
    %c0_3 = arith.constant 0 : index
    %2 = vector.load %arg1[%c32, %c0_3] : memref<152x128xf32, #tpu.memory_space<vmem>>, vector<1x64xf32>
    %cst = arith.constant dense<0.000000e+00> : vector<8x64xf32>
    %3 = tpu.matmul %0, %1, %cst {dimension_numbers = #tpu.dot_dimension_numbers<[1], [0], [0], [1], [0, 0, 1, 1], [], []>} : vector<8x32xf32>, vector<32x64xf32>, vector<8x64xf32> -> vector<8x64xf32>
    %4 = vector.broadcast %2 : vector<1x64xf32> to vector<8x64xf32>
    %5 = arith.addf %3, %4 : vector<8x64xf32>
    %cst_4 = arith.constant 0.000000e+00 : f32
    %6 = vector.broadcast %cst_4 : f32 to vector<8x64xf32>
    %7 = arith.maximumf %5, %6 : vector<8x64xf32>
    %c40 = arith.constant 40 : index
    %c0_5 = arith.constant 0 : index
    %8 = vector.load %arg1[%c40, %c0_5] : memref<152x128xf32, #tpu.memory_space<vmem>>, vector<64x32xf32>
    %c104 = arith.constant 104 : index
    %c0_6 = arith.constant 0 : index
    %9 = vector.load %arg1[%c104, %c0_6] : memref<152x128xf32, #tpu.memory_space<vmem>>, vector<1x32xf32>
    %cst_7 = arith.constant dense<0.000000e+00> : vector<8x32xf32>
    %10 = tpu.matmul %7, %8, %cst_7 {dimension_numbers = #tpu.dot_dimension_numbers<[1], [0], [0], [1], [0, 0, 1, 1], [], []>} : vector<8x64xf32>, vector<64x32xf32>, vector<8x32xf32> -> vector<8x32xf32>
    %11 = vector.broadcast %9 : vector<1x32xf32> to vector<8x32xf32>
    %12 = arith.addf %10, %11 : vector<8x32xf32>
    %cst_8 = arith.constant 0.000000e+00 : f32
    %13 = vector.broadcast %cst_8 : f32 to vector<8x32xf32>
    %14 = arith.maximumf %12, %13 : vector<8x32xf32>
    %c112 = arith.constant 112 : index
    %c0_9 = arith.constant 0 : index
    %15 = vector.load %arg1[%c112, %c0_9] : memref<152x128xf32, #tpu.memory_space<vmem>>, vector<32x128xf32>
    %c144 = arith.constant 144 : index
    %c0_10 = arith.constant 0 : index
    %16 = vector.load %arg1[%c144, %c0_10] : memref<152x128xf32, #tpu.memory_space<vmem>>, vector<1x128xf32>
    %cst_11 = arith.constant dense<0.000000e+00> : vector<8x128xf32>
    %17 = tpu.matmul %14, %15, %cst_11 {dimension_numbers = #tpu.dot_dimension_numbers<[1], [0], [0], [1], [0, 0, 1, 1], [], []>} : vector<8x32xf32>, vector<32x128xf32>, vector<8x128xf32> -> vector<8x128xf32>
    %18 = vector.broadcast %16 : vector<1x128xf32> to vector<8x128xf32>
    %19 = arith.addf %17, %18 : vector<8x128xf32>
    %c0_12 = arith.constant 0 : index
    %c0_13 = arith.constant 0 : index
    %20 = vector.load %arg2[%c0_12, %c0_13] : memref<8x128xf32, #tpu.memory_space<vmem>>, vector<8x128xf32>
    tpu.vector_store %arg2[%c0_12, %c0_13], %19 {strides = array<i32>} : memref<8x128xf32, #tpu.memory_space<vmem>>, vector<8x128xf32>,
    return
  }
}

</mosaic_0001>

<bundles_post_ra>
// kernel: qnetwork_forward.1
= control target key start
LH: loop header
LB: loop body
LE: loop exit
PB: predicated region body
PF: predicated region fallthrough
CT: control target
= control target key end

     0   :  { %7 = vsyncpa [#allocation3], 0  ;;  %s450_s0 = inlined_call_operand.hbm [shape: f32[8,32], index: 0, kind: input, shape index: {}]   ;;  %s451_s1 = inlined_call_operand.hbm [shape: f32[152,128], index: 1, kind: input, shape index: {}]   ;;  %s452_s2 = inlined_call_operand.vmem [shape: f32[8,128], index: 2, kind: output, shape index: {}]  }
   0x1   :  { %8 = vsyncpa [#allocation5], 0  ;;  %s415_s9 = smov [#allocation2]   ;;  %s416_s11 = smov [#allocation4]  }
   0x2   :  { %s15_s10 = sshll.u32 %s415_s9, 4  ;;  %s24_s12 = sshll.u32 %s416_s11, 4  ;;  %s16_s10 = int_to_ptr.vmem [resolvable:$true] %s15_s10  ;;  %s25_s12 = int_to_ptr.vmem [resolvable:$true] %s24_s12 }
   0x3   :  { %s379_s13 = scalar_lea.vmem %s16_s10, 128  ;;  %p384_p1 = scmp.lt.s32.totalorder %s16_s10, %s16_s10 }
   0x4   :  { %p380_p0 = scmp.ne.s32.totalorder %s16_s10, %s379_s13  ;;  %p385_p2 = scmp.lt.s32.totalorder %s379_s13, %s379_s13 }
   0x6   :  { %p386_p3 = por %p385_p2, %p384_p1 }
   0x8   :  { %p387_p4 = pnand %p386_p3, %p380_p0 }
   0xa   :  { %390 = shalt.err (!%p387_p4)
}
   0xb   :  { %18 = dma.hbm_to_vmem [thread:$0]  %s450_s0, 128, %s16_s10, [#allocation3]  }
   0xc   :  { %s399_s16 = scalar_lea.vmem %s25_s12, 2432  ;;  %p404_p6 = scmp.lt.s32.totalorder %s25_s12, %s25_s12 }
   0xd   :  { %p400_p5 = scmp.ne.s32.totalorder %s25_s12, %s399_s16  ;;  %p405_p7 = scmp.lt.s32.totalorder %s399_s16, %s399_s16 }
   0xf   :  { %p406_p8 = por %p405_p7, %p404_p6 }
  0x11   :  { %p407_p9 = pnand %p406_p8, %p400_p5 }
  0x13   :  { %410 = shalt.err (!%p407_p9)
}
  0x14   :  { %s417_s17 = smov 128   ;;  %s418_s18 = smov 8  }
  0x15   :  { %30 = dma.hbm_to_vmem [thread:$0]  %s451_s1, 2432, %s25_s12, [#allocation5], %s417_s17, %s417_s17, %s418_s18  }
  0x16   :  { %411 = dma.done.wait [#allocation3], 128  }
  0x17   :  { %412 = vsyncadd [#allocation3], 4294967168 }
  0x18   :  { %413 = dma.done.wait [#allocation5], 2432  }
  0x19   :  { %414 = vsyncadd [#allocation5], 4294964864  ;;  %v419_v0 = vmov 0.0   ;;  %vm420_vm0 = vmmov 0   ;;  %v41_v1 = vld [vmem:[#allocation4 + $0x18] sm:$0xff]  ;;  %v40_v2 = vld [vmem:[#allocation4 + $0x10] sm:$0xff] }
  0x1a   :  { %324 = vmatprep.subr.mxu0 %v419_v0  ;;  %332 = vmatprep.mubr.msk.f32.mxu0 %vm420_vm0, %v419_v0  ;;  %v129_v3 = vld [vmem:[#allocation4 + $0x60] sm:$0xff]  ;;  %v39_v4 = vld [vmem:[#allocation4 + $0x8] sm:$0xff]  ;;  %v128_v5 = vld [vmem:[#allocation4 + $0x58] sm:$0xff]  ;;  %vm47_vm1 = vcmask 261120   ;;  %vm135_vm2 = vcmask 523264  }
  0x1b   :  { %335 = vmatprep.subr.mxu1 %v419_v0  ;;  %351 = vmatprep.mubr.msk.f32.mxu1 %vm420_vm0, %v419_v0  ;;  %v127_v6 = vld [vmem:[#allocation4 + $0x50] sm:$0xff]  ;;  %v38_v7 = vld [vmem:[#allocation4] sm:$0xff]  ;;  %v37_v8 = vld [vmem:[#allocation2] sm:$0xff] }
  0x1c   :  { %325 = vmatpush3.msra.mxu0 %v41_v1  ;;  %336 = vmatpush3.msra.mxu1 %v129_v3  ;;  %v126_v9 = vld [vmem:[#allocation4 + $0x48] sm:$0xff]  ;;  %v125_v10 = vld [vmem:[#allocation4 + $0x40] sm:$0xff]  ;;  %v124_v11 = vld [vmem:[#allocation4 + $0x38] sm:$0xff] }
  0x1d   :  { %326 = vmatprep.subr.mxu0 %v419_v0  ;;  %337 = vmatprep.subr.mxu1 %v419_v0  ;;  %v123_v12 = vld [vmem:[#allocation4 + $0x30] sm:$0xff]  ;;  %v122_v13 = vld [vmem:[#allocation4 + $0x28] sm:$0xff]  ;;  %v299_v15 = vld [vmem:[#allocation4 + $0x20] ss:$0 sm:$0xff] }
  0x1e   :  { %327 = vmatpush3.msra.mxu0 %v40_v2  ;;  %338 = vmatpush3.msra.mxu1 %v128_v5  ;;  %v213_v14 = vld [vmem:[#allocation4 + $0x88] sm:$0xff]  ;;  %v212_v20 = vld [vmem:[#allocation4 + $0x80] sm:$0xff]  ;;  %v211_v21 = vld [vmem:[#allocation4 + $0x78] sm:$0xff] }
  0x1f   :  { %328 = vmatprep.subr.mxu0 %v419_v0  ;;  %339 = vmatprep.subr.mxu1 %v419_v0  ;;  %v210_v22 = vld [vmem:[#allocation4 + $0x70] sm:$0xff]  ;;  %v301_v23 = vld [vmem:[#allocation4 + $0x68] ss:$0 sm:$0xff] }
  0x20   :  { %329 = vmatpush3.msra.mxu0 %v39_v4  ;;  %340 = vmatpush3.msra.mxu1 %v127_v6  ;;  %v303_v28 = vld [vmem:[#allocation4 + $0x90] ss:$0 sm:$0xff] }
  0x21   :  { %330 = vmatprep.subr.mxu0 %v419_v0  ;;  %341 = vmatprep.subr.mxu1 %v419_v0 }
  0x22   :  { %331 = vmatpush3.msra.mxu0 %v38_v7  ;;  %342 = vmatpush3.msra.mxu1 %v126_v9 }
  0x23   :  { %333 = vmatmul.mubr.msk.f32.vlgmr.msra.gmra.mxu0 %vm47_vm1, %v37_v8  ;;  %343 = vmatprep.subr.mxu1 %v419_v0 }
  0x24   :  { %354 = vmatprep.subr.mxu0 %v419_v0  ;;  %344 = vmatpush3.msra.mxu1 %v125_v10 }
  0x25   :  { %362 = vmatprep.mubr.msk.f32.mxu0 %vm420_vm0, %v419_v0  ;;  %345 = vmatprep.subr.mxu1 %v419_v0 }
  0x26   :  { %346 = vmatpush3.msra.mxu1 %v124_v11  ;;  %355 = vmatpush3.msra.mxu0 %v213_v14 }
  0x27   :  { %347 = vmatprep.subr.mxu1 %v419_v0  ;;  %356 = vmatprep.subr.mxu0 %v419_v0 }
  0x28   :  { %348 = vmatpush3.msra.mxu1 %v123_v12  ;;  %357 = vmatpush3.msra.mxu0 %v212_v20 }
  0x29   :  { %349 = vmatprep.subr.mxu1 %v419_v0  ;;  %358 = vmatprep.subr.mxu0 %v419_v0 }
  0x2a   :  { %350 = vmatpush3.msra.mxu1 %v122_v13  ;;  %359 = vmatpush3.msra.mxu0 %v211_v21 }
  0x2b   :  { %360 = vmatprep.subr.mxu0 %v419_v0 }
  0x2c   :  { %361 = vmatpush3.msra.mxu0 %v210_v22 }
  0xe3   :  { %v117_v16 = vpop.f32.mrf.mxu0 }
  0xe4   :  { %v118_v17 = vadd.f32 %v299_v15, %v117_v16 }
  0xe5   :  { %v334_v18 = vpop.f32.mrf.mxu0 }
  0xe6   :  { %v121_v19 = vmax.f32 %v118_v17, 0.0 }
  0xe8   :  { %352 = vmatmul.mubr.msk.f32.vlgmr.msra.gmra.mxu1 %vm135_vm2, %v121_v19 }
 0x1a8   :  { %v205_v24 = vpop.f32.mrf.mxu1 }
 0x1a9   :  { %v206_v25 = vadd.f32 %v301_v23, %v205_v24 }
 0x1aa   :  { %v353_v26 = vpop.f32.mrf.mxu1 }
 0x1ab   :  { %v209_v27 = vmax.f32 %v206_v25, 0.0 }
 0x1ad   :  { %363 = vmatmul.mubr.msk.f32.vlgmr.msra.gmra.mxu0 %vm47_vm1, %v209_v27 }
 0x26d   :  { %v288_v29 = vpop.f32.mrf.mxu0 }
 0x26e   :  { %v289_v30 = vadd.f32 %v303_v28, %v288_v29 }
 0x26f   :  { %v364_v31 = vpop.f32.mrf.mxu0 }
 0x270   :  { %292 = vst [vmem:[%s452_s2] sm:$0xff] %v289_v30 }
 0x271   :  { %297 = vsyncpa [#allocation3], 1 }
 0x272   :  { %298 = vsyncpa [#allocation5], 1 }

</bundles_post_ra>
